<compile_context>
chip_gen: v7x
topology: tpu7x:2x2x1
jax: 0.10.0
libtpu: 0.0.40
codegen_flags: <defaults>
</compile_context>

<pallas_src>
import functools

import jax
import jax.numpy as jnp
from jax.experimental import pallas as pl
from jax.experimental.pallas import tpu as pltpu


def _dense_kernel(*refs, activation, has_mask):
    if has_mask:
        x_ref, w_ref, b_ref, m_ref, o_ref, acc_ref = refs
    else:
        x_ref, w_ref, b_ref, o_ref, acc_ref = refs
        m_ref = None

    k = pl.program_id(2)

    @pl.when(k == 0)
    def _init():
        acc_ref[...] = jnp.zeros_like(acc_ref)

    acc_ref[...] += jnp.dot(
        x_ref[...], w_ref[...], preferred_element_type=jnp.float32
    )

    @pl.when(k == pl.num_programs(2) - 1)
    def _finalize():
        h = acc_ref[...] + b_ref[...].astype(jnp.float32)   # (tm,tn) + (1,tn)
        if activation == "relu":
            h = jnp.maximum(h, 0.0)
        else:  # sigmoid -> EUP
            h = jax.nn.sigmoid(h)
        if m_ref is not None:
            # mask already carries the 1/keep_prob scale -> single fused multiply
            h = h * m_ref[...].astype(jnp.float32)
        o_ref[...] = h.astype(o_ref.dtype)


def _tile(dim, pref):
    """Prefer a `pref`-sized tile; fall back to the full dim (always legal)."""
    return pref if dim % pref == 0 else dim


def dense_forward(x, w, b, *, dropout=0.0, activation="relu",
                  training=True, rng_key=None, tm=128, tn=128, tk=128):
    """Pallas Dense forward.  x: [M, K], w: [K, N] (= torch W.T), b: [N]."""
    M, K = x.shape
    Kw, N = w.shape
    assert K == Kw and b.shape == (N,)
    assert activation in ("relu", "sigmoid")

    tm = _tile(M, tm)
    tn = _tile(N, tn)
    tk = _tile(K, tk)
    grid = (M // tm, N // tn, K // tk)

    b2 = b.reshape(1, N)

    apply_dropout = bool(training) and dropout > 0.0
    inputs = [x, w, b2]
    in_specs = [
        pl.BlockSpec((tm, tk), lambda i, j, k: (i, k)),
        pl.BlockSpec((tk, tn), lambda i, j, k: (k, j)),
        pl.BlockSpec((1, tn), lambda i, j, k: (0, j)),
    ]
    if apply_dropout:
        if rng_key is None:
            rng_key = jax.random.PRNGKey(0)
        keep_prob = 1.0 - dropout
        # Mask generated ONCE (not regenerated per grid step), pre-scaled.
        mask = (
            jax.random.bernoulli(rng_key, keep_prob, (M, N)).astype(jnp.float32)
            * jnp.float32(1.0 / keep_prob)
        )
        inputs.append(mask)
        in_specs.append(pl.BlockSpec((tm, tn), lambda i, j, k: (i, j)))

    kernel = functools.partial(
        _dense_kernel, activation=activation, has_mask=apply_dropout
    )

    return pl.pallas_call(
        kernel,
        out_shape=jax.ShapeDtypeStruct((M, N), x.dtype),
        grid_spec=pltpu.PrefetchScalarGridSpec(
            num_scalar_prefetch=0,
            grid=grid,
            in_specs=in_specs,
            out_specs=pl.BlockSpec((tm, tn), lambda i, j, k: (i, j)),
            scratch_shapes=[pltpu.VMEM((tm, tn), jnp.float32)],
        ),
        compiler_params=pltpu.CompilerParams(
            dimension_semantics=("parallel", "parallel", "arbitrary"),
        ),
    )(*inputs)


if __name__ == "__main__":
    key = jax.random.PRNGKey(0)
    k_x, k_w, k_b, k_drop = jax.random.split(key, 4)

    # batch=16, input_size=128, output_size=256
    M, K, N = 16, 128, 256
    x = jax.random.normal(k_x, (M, K), dtype=jnp.float32)
    w = jax.random.normal(k_w, (K, N), dtype=jnp.float32) * 0.05  # = torch W.T
    b = jax.random.normal(k_b, (N,), dtype=jnp.float32)

    ref_h = jnp.maximum(x @ w + b, 0.0)

    # 1) module default: dropout=0 -> pure Linear + ReLU
    out = jax.block_until_ready(dense_forward(x, w, b, dropout=0.0))
    assert out.shape == (M, N) and out.dtype == x.dtype
    assert bool(jnp.allclose(out, ref_h, atol=1e-4, rtol=1e-4))

    # 2) training-mode dropout path (regenerate the identical mask for the ref)
    p = 0.5
    out_d = jax.block_until_ready(
        dense_forward(x, w, b, dropout=p, training=True, rng_key=k_drop)
    )
    mask_ref = (
        jax.random.bernoulli(k_drop, 1.0 - p, (M, N)).astype(jnp.float32)
        / (1.0 - p)
    )
    assert bool(jnp.allclose(out_d, ref_h * mask_ref, atol=1e-4, rtol=1e-4))

    # 3) eval mode with nonzero p is a passthrough of the activated linear
    out_e = jax.block_until_ready(
        dense_forward(x, w, b, dropout=p, training=False, rng_key=k_drop)
    )
    assert bool(jnp.allclose(out_e, ref_h, atol=1e-4, rtol=1e-4))

    # 4) sigmoid activation variant
    out_s = jax.block_until_ready(
        dense_forward(x, w, b, dropout=0.0, activation="sigmoid")
    )
    assert bool(jnp.allclose(out_s, jax.nn.sigmoid(x @ w + b), atol=1e-4, rtol=1e-4))

    print("KERNEL_OK")
</pallas_src>

<mosaic_0001>
module attributes {stable_mosaic.version = 11 : i64} {
  func.func @_dense_kernel(%arg0: i32, %arg1: i32, %arg2: i32, %arg3: memref<16x128xf32, #tpu.memory_space<vmem>>, %arg4: memref<128x128xf32, #tpu.memory_space<vmem>>, %arg5: memref<1x128xf32, #tpu.memory_space<vmem>>, %arg6: memref<16x128xf32, #tpu.memory_space<vmem>>, %arg7: memref<16x128xf32, #tpu.memory_space<vmem>>) attributes {dimension_semantics = [#tpu.dimension_semantics<parallel>, #tpu.dimension_semantics<parallel>, #tpu.dimension_semantics<arbitrary>], iteration_bounds = array<i64: 1, 2, 1>, scalar_prefetch = 0 : i64, scratch_operands = 1 : i64, tpu.core_type = #tpu.core_type<tc>, window_params = [{transform_indices = @transform_0, window_bounds = array<i64: 16, 128>}, {transform_indices = @transform_1, window_bounds = array<i64: 128, 128>}, {transform_indices = @transform_2, window_bounds = array<i64: 1, 128>}, {transform_indices = @transform_3, window_bounds = array<i64: 16, 128>}]} {
    %c0_i32 = arith.constant 0 : i32
    %0 = arith.cmpi eq, %arg2, %c0_i32 : i32
    %1 = arith.extui %0 : i1 to i32
    %c0_i32_0 = arith.constant 0 : i32
    %2 = arith.cmpi ne, %1, %c0_i32_0 : i32
    scf.if %2 {
      %cst_10 = arith.constant 0.000000e+00 : f32
      %12 = vector.broadcast %cst_10 : f32 to vector<16x128xf32>
      %c0_11 = arith.constant 0 : index
      %c0_12 = arith.constant 0 : index
      %13 = vector.load %arg7[%c0_11, %c0_12] : memref<16x128xf32, #tpu.memory_space<vmem>>, vector<16x128xf32>
      tpu.vector_store %arg7[%c0_11, %c0_12], %12 {strides = array<i32>} : memref<16x128xf32, #tpu.memory_space<vmem>>, vector<16x128xf32>,
    } else {
    }
    %c0 = arith.constant 0 : index
    %c0_1 = arith.constant 0 : index
    %3 = vector.load %arg7[%c0, %c0_1] : memref<16x128xf32, #tpu.memory_space<vmem>>, vector<16x128xf32>
    %c0_2 = arith.constant 0 : index
    %c0_3 = arith.constant 0 : index
    %4 = vector.load %arg3[%c0_2, %c0_3] : memref<16x128xf32, #tpu.memory_space<vmem>>, vector<16x128xf32>
    %c0_4 = arith.constant 0 : index
    %c0_5 = arith.constant 0 : index
    %5 = vector.load %arg4[%c0_4, %c0_5] : memref<128x128xf32, #tpu.memory_space<vmem>>, vector<128x128xf32>
    %cst = arith.constant dense<0.000000e+00> : vector<16x128xf32>
    %6 = tpu.matmul %4, %5, %cst {dimension_numbers = #tpu.dot_dimension_numbers<[1], [0], [0], [1], [0, 0, 1, 1], [], []>} : vector<16x128xf32>, vector<128x128xf32>, vector<16x128xf32> -> vector<16x128xf32>
    %7 = arith.addf %3, %6 : vector<16x128xf32>
    %c0_6 = arith.constant 0 : index
    %c0_7 = arith.constant 0 : index
    %8 = vector.load %arg7[%c0_6, %c0_7] : memref<16x128xf32, #tpu.memory_space<vmem>>, vector<16x128xf32>
    tpu.vector_store %arg7[%c0_6, %c0_7], %7 {strides = array<i32>} : memref<16x128xf32, #tpu.memory_space<vmem>>, vector<16x128xf32>,
    %c0_i32_8 = arith.constant 0 : i32
    %9 = arith.cmpi eq, %arg2, %c0_i32_8 : i32
    %10 = arith.extui %9 : i1 to i32
    %c0_i32_9 = arith.constant 0 : i32
    %11 = arith.cmpi ne, %10, %c0_i32_9 : i32
    scf.if %11 {
      %c0_10 = arith.constant 0 : index
      %c0_11 = arith.constant 0 : index
      %12 = vector.load %arg7[%c0_10, %c0_11] : memref<16x128xf32, #tpu.memory_space<vmem>>, vector<16x128xf32>
      %c0_12 = arith.constant 0 : index
      %c0_13 = arith.constant 0 : index
      %13 = vector.load %arg5[%c0_12, %c0_13] : memref<1x128xf32, #tpu.memory_space<vmem>>, vector<1x128xf32>
      %14 = vector.broadcast %13 : vector<1x128xf32> to vector<16x128xf32>
      %15 = arith.addf %12, %14 : vector<16x128xf32>
      %cst_14 = arith.constant 0.000000e+00 : f32
      %16 = vector.broadcast %cst_14 : f32 to vector<16x128xf32>
      %17 = arith.maximumf %15, %16 : vector<16x128xf32>
      %c0_15 = arith.constant 0 : index
      %c0_16 = arith.constant 0 : index
      %18 = vector.load %arg6[%c0_15, %c0_16] : memref<16x128xf32, #tpu.memory_space<vmem>>, vector<16x128xf32>
      tpu.vector_store %arg6[%c0_15, %c0_16], %17 {strides = array<i32>} : memref<16x128xf32, #tpu.memory_space<vmem>>, vector<16x128xf32>,
    } else {
    }
    return
  }
  func.func @transform_0(%arg0: i32, %arg1: i32, %arg2: i32) -> (i32, i32) {
    %c0_i32 = arith.constant 0 : i32
    return %arg0, %arg2 : i32, i32
  }
  func.func @transform_1(%arg0: i32, %arg1: i32, %arg2: i32) -> (i32, i32) {
    %c0_i32 = arith.constant 0 : i32
    return %arg2, %arg1 : i32, i32
  }
  func.func @transform_2(%arg0: i32, %arg1: i32, %arg2: i32) -> (i32, i32) {
    %c0_i32 = arith.constant 0 : i32
    %c0_i32_0 = arith.constant 0 : i32
    return %c0_i32, %arg1 : i32, i32
  }
  func.func @transform_3(%arg0: i32, %arg1: i32, %arg2: i32) -> (i32, i32) {
    %c0_i32 = arith.constant 0 : i32
    return %arg0, %arg1 : i32, i32
  }
}

</mosaic_0001>

<bundles_post_ra>
// kernel: tpu_custom_call.1
= control target key start
LH: loop header
LB: loop body
LE: loop exit
PB: predicated region body
PF: predicated region fallthrough
CT: control target
= control target key end

     0   :  { %8 = vsyncpa [#allocation4], 0  ;;  %s1113_s0 = inlined_call_operand.hbm [shape: f32[16,128], index: 0, kind: input, shape index: {}]   ;;  %s1114_s1 = inlined_call_operand.hbm [shape: f32[128,256], index: 1, kind: input, shape index: {}]   ;;  %s1115_s2 = inlined_call_operand.vmem [shape: f32[1,256], index: 2, kind: input, shape index: {}]   ;;  %s1116_s3 = inlined_call_operand.hbm [shape: f32[16,256], index: 3, kind: output, shape index: {}]  }
   0x1   :  { %9 = vsyncpa [#allocation7], 0 }
   0x2   :  { %11 = vsyncpa [#allocation7 + $0x1], 0 }
   0x3   :  { %12 = vsyncpa [#allocation5], 0 }
   0x4   :  { %14 = vsyncpa [#allocation5 + $0x1], 0  ;;  %s864_s12 = smov 0   ;;  %s866_s13 = smov 0  }
   0x5   :  { %s868_s14 = smov 0   ;;  %s870_s15 = smov 0  }
   0x6   :  { %s872_s16 = smov 0   ;;  %s874_s17 = smov 0  }
   0x7 LB: > { %s509_s18 = sadd.s32 4294967295, %s833_s17   ;;  %s510_s19 = sadd.s32 4294967294, %s833_s17   ;;  %s833_s17 = sphi %s874_s17, %s20_s17   ;;  %s829_s16 = sphi %s872_s16, %s1144_s16   ;;  %s825_s15 = sphi %s870_s15, %s1143_s15   ;;  %s821_s14 = sphi %s868_s14, %s1142_s14   ;;  %s817_s13 = sphi %s866_s13, %s1141_s13   ;;  %s813_s12 = sphi %s864_s12, %s1140_s12  }
   0x8   : > { %p83_p0 = scmp.ne.s32.totalorder %s821_s14, %s817_s13  ;;  %p84_p1 = scmp.eq.s32.totalorder %s833_s17, 0 }
   0x9   : > { %p89_p2 = scmp.ne.s32.totalorder %s817_s13, %s813_s12  ;;  %p901_p3 = scmp.eq.s32.totalorder %s509_s18, 0 }
   0xa   : > { %p905_p4 = por %p84_p1, %p83_p0  ;;  %p141_p5 = scmp.eq.s32.totalorder %s509_s18, 1 }
   0xb   : > { %s1124_s20 = scalar_select %p901_p3, 1, 0 }
   0xc   : > { %p911_p6 = por %p901_p3, %p89_p2  ;;  %p147_p7 = scmp.eq.s32.totalorder %s510_s19, 1 }
   0xd   : > { %p915_p8 = por %p141_p5, %p83_p0  ;;  %p511_p9 = scmp.ge.s32.totalorder %s833_s17, 1 }
   0xe   : > { %s1126_s22 = scalar_select %p911_p6, 1, 0 }
   0xf   : > { %s1127_s23 = scalar_select %p915_p8, 1, 0 }
  0x10   : > { %p920_p10 = por %p147_p7, %p89_p2  ;;  %p154_p11 = scmp.lt.s32.totalorder %s833_s17, 3 }
  0x11   : > { %s835_s26 = smov [#allocation3]   ;;  %p631_p1 = scmp.lt.s32.totalorder %s833_s17, 2 }
  0x12   : > { %s1128_s24 = scalar_select %p920_p10, 1, 0 }
  0x13   : > { %p925_p12 = pnand %p511_p9, %p154_p11  ;;  %s170_s27 = sshll.u32 %s835_s26, 4  ;;  %s929_s27 = int_to_ptr.vmem [resolvable:$true] %s170_s27 }
  0x14   : > { %p943_p2 = pnand %p631_p1, %p905_p4  ;;  %s35_s30 = sadd.s32 1, %s829_s16 }
  0x15   : > { %s1129_s25 = scalar_select %p925_p12, 1, 0 }
  0x16   : > { %p618_p13 = pneg %p925_p12  ;;  %s689_s6 = scalar_lea.hbm %s1113_s0, 256 }
  0x17   : > { %s1131_s29 = scalar_select %p943_p2, 1, 0 }
  0x18   : > { %p937_p5 = pnand %p618_p13, %p901_p3  ;;  %p690_p7 = scmp.ne.s32.totalorder %s1113_s0, %s689_s6 }
  0x19   : > { %p696_p4 = scmp.lt.u32.totalorder %s689_s6, %s1113_s0 }
  0x1a   : > { %p691_p9 = pneg %p937_p5 }
  0x1c   : > { %p692_p11 = pnand %p691_p9, %p690_p7 }
  0x1e   : > { %p693_p13 = pneg %p692_p11 }
  0x20   : > { %p698_p1 = pnand %p696_p4, %p693_p13 }
  0x22   : > { %701 = shalt.err (!%p698_p1)
}
  0x23   : > { %s702_s11 = scalar_lea.vmem %s929_s27, 256  ;;  %p710_p6 = scmp.lt.s32.totalorder %s929_s27, %s929_s27 }
  0x24   : > { %p703_p0 = scmp.ne.s32.totalorder %s929_s27, %s702_s11  ;;  %p711_p3 = scmp.lt.s32.totalorder %s702_s11, %s702_s11 }
  0x26   : > { %p705_p10 = pnand %p703_p0, %p691_p9  ;;  %p712_p12 = por %p711_p3, %p710_p6 }
  0x28   : > { %p706_p8 = pneg %p705_p10 }
  0x2a   : > { %p713_p2 = pnand %p712_p12, %p706_p8 }
  0x2c   : > { %716 = shalt.err (!%p713_p2)
}
  0x2d   : > { %s1123_s18 = smov 128   ;;  %s837_s19 = smov 8  }
  0x2e   : > { %621 = dma.hbm_to_vmem [thread:$0]  (!%p937_p5), %s1113_s0, 256, %s929_s27, [#allocation4], %s1123_s18, %s1123_s18, %s837_s19  }
  0x2f   : > { %p37_p3 = scmp.ge.s32.totalorder %s35_s30, 2  ;;  %s76_s4 = sadd.s32 1, %s821_s14 }
  0x30   : > { %s184_s5 = sand.u32 1, %s821_s14   ;;  %s515_s8 = sshll.u32 %s829_s16, 7 }
  0x31   : > { %s1146_s30 = smov (%p37_p3, %s35_s30), 0  ;;  %s514_s6 = sshll.u32 %s184_s5, 7 }
  0x32   : > { %s72_s7 = ssub.s32 %s829_s16, %s1146_s30  ;;  %s982_s10 = scalar_lea.hbm %s1114_s1, %s515_s8 }
  0x33   : > { %p74_p6 = scmp.eq.s32.totalorder %s72_s7, 0  ;;  %s188_s27 = scalar_lea.vmem [#allocation6], %s514_s6 }
  0x34   : > { %s197_s11 = sshll.u32 %s188_s27, 4  ;;  %s989_s26 = scalar_lea.sflag [#allocation7], %s184_s5  ;;  %s987_s11 = int_to_ptr.vmem [resolvable:$true] %s197_s11 }
  0x35   : > { %s985_s21 = scalar_select %p74_p6, %s821_s14, %s76_s4  }
  0x36   : > { %s717_s18 = scalar_lea.hbm %s982_s10, 2048  ;;  %p1132_p10 = scmp.ne.s32.totalorder %s1131_s29, 0 }
  0x37   : > { %p718_p8 = scmp.ne.s32.totalorder %s982_s10, %s717_s18  ;;  %s722_s28 = scalar_lea.hbm %s1114_s1, 4096 }
  0x38   : > { %p719_p12 = pneg %p1132_p10  ;;  %p723_p2 = scmp.lt.u32.totalorder %s982_s10, %s1114_s1 }
  0x39   : > { %p724_p7 = scmp.lt.u32.totalorder %s722_s28, %s717_s18  ;;  %p726_p11 = scmp.lt.u32.totalorder %s717_s18, %s982_s10 }
  0x3a   : > { %p720_p0 = pnand %p719_p12, %p718_p8 }
  0x3b   : > { %p725_p9 = por %p724_p7, %p723_p2 }
  0x3c   : > { %p721_p5 = pneg %p720_p0 }
  0x3d   : > { %p727_p13 = por %p726_p11, %p725_p9 }
  0x3f   : > { %p728_p4 = pnand %p727_p13, %p721_p5 }
  0x41   : > { %731 = shalt.err (!%p728_p4)
}
  0x42   : > { %s732_s4 = scalar_lea.vmem %s987_s11, 2048  ;;  %s838_s5 = smov [#allocation6]  }
  0x43   : > { %p733_p1 = scmp.ne.s32.totalorder %s987_s11, %s732_s4  ;;  %s737_s27 = sshll.u32 %s838_s5, 4  ;;  %s738_s27 = int_to_ptr.vmem [resolvable:$false] %s737_s27 }
  0x44   : > { %s739_s7 = scalar_lea.vmem %s738_s27, 4096  ;;  %p740_p8 = scmp.lt.s32.totalorder %s987_s11, %s738_s27 }
  0x45   : > { %p735_p3 = pnand %p733_p1, %p719_p12  ;;  %p741_p0 = scmp.lt.s32.totalorder %s739_s7, %s732_s4 }
  0x47   : > { %p736_p6 = pneg %p735_p3  ;;  %p742_p2 = por %p741_p0, %p740_p8 }
  0x49   : > { %p743_p7 = pnand %p742_p2, %p736_p6 }
  0x4b   : > { %746 = shalt.err (!%p743_p7)
}
  0x4c   : > { %s839_s18 = smov 256   ;;  %s1133_s8 = smov 128  }
  0x4d   : > { %625 = dma.hbm_to_vmem [thread:$0]  (!%p1132_p10), %s982_s10, 2048, %s987_s11, %s989_s26, %s839_s18, %s1133_s8, %s837_s19  }
  0x4e   : > { %p1134_p12 = scmp.ne.s32.totalorder %s1129_s25, 0 }
  0x4f   : > { %p1135_p5 = scmp.ne.s32.totalorder (!%p1134_p12), %s1124_s20, 0 }
  0x50   : > { %215 = sbr.rel (%p1134_p12) target bundleno = 360 (0x168), region = 32 }
  0x57   : > { %800 = dma.done.wait (%p1135_p5), [#allocation4], 256  }
  0x58   : > { %802 = vsyncadd (%p1135_p5), [#allocation4], 4294967040  ;;  %s1026_s28 = sand.u32 1, %s817_s13   ;;  %p1136_p10 = scmp.ne.s32.totalorder %s1126_s22, 0 }
  0x59   : > { %s518_s29 = sshll.u32 %s1026_s28, 7  ;;  %s222_s6 = scalar_lea.sflag [#allocation7], %s1026_s28 }
  0x5a   : > { %s1030_s9 = scalar_lea.vmem [#allocation6], %s518_s29 }
  0x5b   : > { %804 = dma.done.wait (%p1136_p10), %s222_s6, 2048  }
  0x5c   : > { %806 = vsyncadd (%p1136_p10), %s222_s6, 4294965248  ;;  %v267_v0 = vld [vmem:[%s1030_s9] sm:$0xff]  ;;  %v268_v1 = vld [vmem:[%s1030_s9 + $0x8] sm:$0xff]  ;;  %p253_p9 = scmp.lt.s32.totalorder %s825_s15, 1  ;;  %s519_s22 = sshll.u32 %s1026_s28, 4 }
  0x5d   : > { %v269_v2 = vld [vmem:[%s1030_s9 + $0x10] sm:$0xff]  ;;  %v578_v3 = vpack.c.bf16 %v268_v1, %v267_v0  ;;  %v270_v4 = vld [vmem:[%s1030_s9 + $0x18] sm:$0xff]  ;;  %v271_v6 = vld [vmem:[%s1030_s9 + $0x20] sm:$0xff]  ;;  %s250_s11 = scalar_lea.vmem [#allocation8], %s519_s22  ;;  %s522_s4 = sshll.u32 %s825_s15, 7 }
  0x5e   : > { %v582_v5 = vpack.c.bf16 %v270_v4, %v269_v2  ;;  %v272_v7 = vld [vmem:[%s1030_s9 + $0x28] sm:$0xff]  ;;  %v265_v9 = vld [vmem:[#allocation3] sm:$0xff]  ;;  %v274_v11 = vld [vmem:[%s1030_s9 + $0x38] sm:$0xff]  ;;  %s254_s20 = scalar_select %p253_p9, %s825_s15, 1 }
  0x5f   : > { %579 = vmatprep.subr.bf16.mxu0 %v578_v3  ;;  %v586_v8 = vpack.c.bf16 %v272_v7, %v271_v6  ;;  %v273_v10 = vld [vmem:[%s1030_s9 + $0x30] sm:$0xff]  ;;  %575 = vmatprep.mubr.f32.mxu0 %v265_v9  ;;  %v275_v13 = vld [vmem:[%s1030_s9 + $0x40] sm:$0xff]  ;;  %v276_v14 = vld [vmem:[%s1030_s9 + $0x48] sm:$0xff]  ;;  %s396_s26 = sshll.u32 %s250_s11, 4  ;;  %s1064_s7 = scalar_lea.hbm %s1116_s3, %s522_s4  ;;  %s1059_s26 = int_to_ptr.vmem [resolvable:$true] %s396_s26 }
  0x60   : > { %581 = vmatpush3.bf16.msra.mxu0 %v578_v3  ;;  %v590_v12 = vpack.c.bf16 %v274_v11, %v273_v10  ;;  %v594_v15 = vpack.c.bf16 %v276_v14, %v275_v13  ;;  %v277_v16 = vld [vmem:[%s1030_s9 + $0x50] sm:$0xff]  ;;  %v278_v17 = vld [vmem:[%s1030_s9 + $0x58] sm:$0xff]  ;;  %v279_v19 = vld [vmem:[%s1030_s9 + $0x60] sm:$0xff]  ;;  %s255_s10 = scalar_lea.vmem %s1115_s2, %s254_s20  ;;  %s381_s18 = scalar_lea.sflag [#allocation5], %s1026_s28 }
  0x61   : > { %583 = vmatprep.subr.bf16.mxu0 %v582_v5  ;;  %v598_v18 = vpack.c.bf16 %v278_v17, %v277_v16  ;;  %v280_v20 = vld [vmem:[%s1030_s9 + $0x68] sm:$0xff]  ;;  %v281_v22 = vld [vmem:[%s1030_s9 + $0x70] sm:$0xff]  ;;  %v282_v23 = vld [vmem:[%s1030_s9 + $0x78] sm:$0xff]  ;;  %s747_s8 = scalar_lea.vmem %s1059_s26, 256  ;;  %p1137_p13 = scmp.ne.s32.totalorder %s1127_s23, 0 }
  0x62   : > { %v602_v21 = vpack.c.bf16 %v280_v20, %v279_v19  ;;  %v606_v24 = vpack.c.bf16 %v282_v23, %v281_v22  ;;  %v266_v25 = vld [vmem:[#allocation3 + $0x8] sm:$0xff]  ;;  %v520_v26 = vld [vmem:[%s255_s10] ss:$0 sm:$0xff]  ;;  %p748_p11 = scmp.ne.s32.totalorder %s1059_s26, %s747_s8  ;;  %s840_s15 = smov [#allocation8]  }
  0x63   : > { %s751_s29 = sshll.u32 %s840_s15, 4  ;;  %s752_s29 = int_to_ptr.vmem [resolvable:$false] %s751_s29 }
  0x64   : > { %585 = vmatpush3.bf16.msra.mxu0 %v582_v5  ;;  %p749_p4 = pnand %p748_p11, %p1137_p13  ;;  %s753_s6 = scalar_lea.vmem %s752_s29, 512 }
  0x65   : > { %587 = vmatprep.subr.bf16.mxu0 %v586_v8  ;;  %p754_p3 = scmp.lt.s32.totalorder %s1059_s26, %s752_s29  ;;  %p755_p6 = scmp.lt.s32.totalorder %s753_s6, %s747_s8 }
  0x66   : > { %p750_p1 = pneg %p749_p4 }
  0x67   : > { %p756_p8 = por %p755_p6, %p754_p3 }
  0x68   : > { %589 = vmatpush3.bf16.msra.mxu0 %v586_v8 }
  0x69   : > { %591 = vmatprep.subr.bf16.mxu0 %v590_v12  ;;  %p757_p0 = pnand %p756_p8, %p750_p1 }
  0x6c   : > { %593 = vmatpush3.bf16.msra.mxu0 %v590_v12 }
  0x6d   : > { %595 = vmatprep.subr.bf16.mxu0 %v594_v15 }
  0x70   : > { %597 = vmatpush3.bf16.msra.mxu0 %v594_v15 }
  0x71   : > { %599 = vmatprep.subr.bf16.mxu0 %v598_v18 }
  0x74   : > { %601 = vmatpush3.bf16.msra.mxu0 %v598_v18 }
  0x75   : > { %603 = vmatprep.subr.bf16.mxu0 %v602_v21 }
  0x78   : > { %605 = vmatpush3.bf16.msra.mxu0 %v602_v21 }
  0x79   : > { %607 = vmatprep.subr.bf16.mxu0 %v606_v24 }
  0x7c   : > { %609 = vmatpush3.bf16.msra.mxu0 %v606_v24 }
  0x7f   : > { %576 = vmatmul.mubr.f32.vlgmr.msra.gmra.mrb[0].mxu0 %v266_v25 }
 0x152   : > { %v577_v27 = vpop.f32.mrb[0].mxu0 }
 0x153   : > { %v375_v28 = vadd.f32 %v577_v27, %v520_v26  ;;  %v349_v29 = vpop.f32.mrb[1].mxu0 }
 0x154   : > { %v374_v30 = vadd.f32 %v520_v26, %v349_v29 }
 0x155   : > { %v377_v31 = vmax.f32 %v375_v28, 0.0 }
 0x156   : > { %v376_v32 = vmax.f32 %v374_v30, 0.0 }
 0x157   : > { %379 = vst [vmem:[%s250_s11 + $0x8] sm:$0xff] %v377_v31 }
 0x158   : > { %378 = vst [vmem:[%s250_s11] sm:$0xff] %v376_v32 }
 0x159   : > { %760 = shalt.err (!%p757_p0)
}
 0x15a   : > { %s761_s9 = scalar_lea.hbm %s1064_s7, 256  ;;  %s765_s25 = scalar_lea.hbm %s1116_s3, 512 }
 0x15b   : > { %p762_p2 = scmp.ne.s32.totalorder %s1064_s7, %s761_s9  ;;  %p766_p5 = scmp.lt.u32.totalorder %s1064_s7, %s1116_s3 }
 0x15c   : > { %p767_p10 = scmp.lt.u32.totalorder %s765_s25, %s761_s9  ;;  %p769_p11 = scmp.lt.u32.totalorder %s761_s9, %s1064_s7 }
 0x15d   : > { %p763_p7 = pnand %p762_p2, %p1137_p13 }
 0x15e   : > { %p768_p9 = por %p767_p10, %p766_p5 }
 0x15f   : > { %p764_p12 = pneg %p763_p7 }
 0x160   : > { %p770_p4 = por %p769_p11, %p768_p9 }
 0x162   : > { %p771_p1 = pnand %p770_p4, %p764_p12 }
 0x164   : > { %774 = shalt.err (!%p771_p1)
}
 0x165   : > { %s841_s11 = smov 128   ;;  %s842_s4 = smov 256  }
 0x166   : > { %s843_s5 = smov 8  }
 0x167   : > { %616 = dma.vmem_to_hbm [thread:$0]  (%p1137_p13), %s1059_s26, 256, %s1064_s7, %s381_s18, %s841_s11, %s842_s4, %s843_s5  }
 0x168 PF: > { %s411_s27 = sand.u32 1, %s813_s12   ;;  %p1138_p3 = scmp.ne.s32.totalorder %s1128_s24, 0 }
 0x169   : > { %p1139_p6 = scmp.ge.s32.totalorder %s833_s17, 2  ;;  %s412_s8 = scalar_lea.sflag [#allocation5], %s411_s27 }
 0x16b   : > { %p627_p8 = pnand %p1139_p6, %p1138_p3 }
 0x16d   : > { %808 = dma.done.wait (!%p627_p8), %s412_s8, 256  }
 0x16e   : > { %810 = vsyncadd (!%p627_p8), %s412_s8, 4294967040  ;;  %s20_s17 = sadd.s32 1, %s833_s17   ;;  %s1140_s12 = smov %s817_s13 }
 0x16f   : > { %p17_p0 = scmp.ge.s32.totalorder %s20_s17, 4   ;;  %s1141_s13 = smov %s821_s14 }
 0x170   : > { %s1142_s14 = smov %s985_s21  ;;  %s1143_s15 = smov %s829_s16 }
 0x171   : > { %s1144_s16 = smov %s1146_s30  ;;  %19 = sbr.rel (!%p17_p0) target bundleno = 7 (0x7), region = 94 }
 0x178   :  { %417 = vsyncpa [#allocation4], 1 }
 0x179   :  { %419 = vsyncpa [#allocation4 + $0x1], 1 }
 0x17a   :  { %420 = vsyncpa [#allocation7], 1 }
 0x17b   :  { %422 = vsyncpa [#allocation7 + $0x1], 1 }
 0x17c   :  { %423 = vsyncpa [#allocation5], 1 }
 0x17d   :  { %425 = vsyncpa [#allocation5 + $0x1], 1 }

</bundles_post_ra>
